<compile_context>
chip_gen: v6e
topology: v6e:2x2x1
jax: 0.10.0
libtpu: 0.0.40
codegen_flags: <defaults>
</compile_context>

<pallas_src>
import functools

import jax
import jax.numpy as jnp
from jax.experimental import pallas as pl
from jax.experimental.pallas import tpu as pltpu


# -----------------------------------------------------------------------------
# Pallas kernels: fused transposed GEMM + bias + PReLU (+ fused 1x1 skip)
# -----------------------------------------------------------------------------
def _convT_kernel(alpha_ref, w_ref, b_ref, a_ref, o_ref):
    # w: (OC, K) bf16, a: (K, tm) bf16, b: (OC, 1) f32, alpha: (1, 1) f32.
    # Output tile (OC, tm): tm (= spatial*batch) is the lane dimension.
    y = jnp.dot(w_ref[...], a_ref[...],
                preferred_element_type=jnp.float32) + b_ref[...]
    o_ref[...] = jnp.where(y >= 0.0, y, alpha_ref[...] * y).astype(o_ref.dtype)


def _convT_skip_kernel(alpha_ref, w_ref, b_ref, a_ref, ws_ref, bs_ref, xs_ref,
                       o_ref):
    # Second resblock conv fused with the conv1x1 skip (second small dot on
    # the same lane tile) and the residual add, all in the f32 epilogue.
    y = jnp.dot(w_ref[...], a_ref[...], preferred_element_type=jnp.float32)
    s = jnp.dot(ws_ref[...], xs_ref[...], preferred_element_type=jnp.float32)
    y = y + b_ref[...] + s + bs_ref[...]
    o_ref[...] = jnp.where(y >= 0.0, y, alpha_ref[...] * y).astype(o_ref.dtype)


# -----------------------------------------------------------------------------
# Pallas wrapper: tiled over M (lanes); weights/bias stay resident
# -----------------------------------------------------------------------------
_TM_MAX = 2048   # bf16 A tile (K<=~200) stays far below v7x's 32 MiB scoped VMEM


def _choose_tm(M):
    """Lane-tile size: full extent or a 128-multiple divisor (avoid padding)."""
    if M <= _TM_MAX:
        if M >= 256 and M % 256 == 0:
            return M // 2            # grid of 2 -> both v7x TensorCores busy
        return M                     # full extent is always a legal block dim
    for t in range(_TM_MAX - (_TM_MAX % 128), 127, -128):
        if M % t == 0:
            return t
    return _TM_MAX                   # last resort: minimal padding of last tile


def _pallas_convT(w, b, a, alpha, out_dtype, skip=None):
    """y = prelu(w @ a + b [+ ws @ xs + bs], alpha) with (OC, M) output.

    w: (OC, K) bf16, a: (K, M) bf16, b: (OC, 1) f32, alpha: scalar (1.0 = id).
    skip: optional (ws (OC, C) bf16, bs (OC, 1) f32, xs (C, M) bf16).
    """
    OC, K = w.shape
    M = a.shape[1]
    tm = _choose_tm(M)
    grid_m = pl.cdiv(M, tm)
    Mp = grid_m * tm
    pad_m = Mp - M
    if pad_m:
        a = jnp.pad(a, ((0, 0), (0, pad_m)))

    alpha_arr = jnp.reshape(jnp.asarray(alpha, jnp.float32), (1, 1))

    def resident(shape):
        return pl.BlockSpec(shape, lambda i: (0, 0))

    def tiled(rows):
        return pl.BlockSpec((rows, tm), lambda i: (0, i))

    in_specs = [resident((1, 1)), resident((OC, K)), resident((OC, 1)), tiled(K)]
    inputs = [alpha_arr, w, b, a]
    kernel = _convT_kernel
    if skip is not None:
        ws, bs, xs = skip
        if pad_m:
            xs = jnp.pad(xs, ((0, 0), (0, pad_m)))
        in_specs += [resident(ws.shape), resident((OC, 1)), tiled(xs.shape[0])]
        inputs += [ws, bs, xs]
        kernel = _convT_skip_kernel

    out = pl.pallas_call(
        kernel,
        out_shape=jax.ShapeDtypeStruct((OC, Mp), out_dtype),
        grid=(grid_m,),
        in_specs=in_specs,
        out_specs=pl.BlockSpec((OC, tm), lambda i: (0, i)),
        compiler_params=pltpu.CompilerParams(
            dimension_semantics=("parallel",),      # megacore-shard the M tiles
            vmem_limit_bytes=32 * 1024 * 1024),
    )(*inputs)
    return out[:, :M] if pad_m else out


# -----------------------------------------------------------------------------
# Conv building blocks (transposed im2col glue in JAX, fused GEMM in Pallas)
# -----------------------------------------------------------------------------
def _im2col_T(x, k, stride, pad):
    """x: (C, B, H, W) -> patches^T (k*k*C, B*OH*OW), plus OH, OW.

    Strides/pads are static Python ints (fixes the traced-slice bug); columns
    are already in the (K, M) layout consumed by the kernel (no transposes).
    """
    C, B, H, W = x.shape
    xp = jnp.pad(x, ((0, 0), (0, 0), (pad, pad), (pad, pad)))
    OH = (H + 2 * pad - k) // stride + 1
    OW = (W + 2 * pad - k) // stride + 1
    cols = []
    for kh in range(k):
        for kw in range(k):
            cols.append(xp[:, :, kh:kh + stride * OH:stride,
                           kw:kw + stride * OW:stride])
    patches = jnp.stack(cols, axis=0)               # (k*k, C, B, OH, OW)
    return patches.reshape(k * k * C, B * OH * OW), OH, OW


def conv2d_T(x, w_packed, b, stride, alpha=None, out_dtype=jnp.bfloat16, pad=1):
    """3x3 conv on CBHW features.  w_packed: (OC, 9*C) bf16, b: (OC, 1) f32."""
    C, B, H, W = x.shape
    OC = w_packed.shape[0]
    a, OH, OW = _im2col_T(x, 3, stride, pad)
    if alpha is None:
        alpha = jnp.asarray(1.0, jnp.float32)       # pure linear epilogue
    y = _pallas_convT(w_packed, b, a, alpha, out_dtype)
    return y.reshape(OC, B, OH, OW)


def injector_concat(x, inj, p):
    """injectorBlock (Linear -> PReLU, plain jnp) + broadcast + channel concat."""
    l = inj @ p['w'].T + p['b']                      # (B, inj_out) -- tiny GEMM
    l = jnp.where(l >= 0.0, l, p['alpha'] * l)
    C, B, H, W = x.shape
    l_t = l.T.astype(x.dtype)                        # (inj_out, B)
    l_b = jnp.broadcast_to(l_t[:, :, None, None], (l_t.shape[0], B, H, W))
    return jnp.concatenate([x, l_b], axis=0)


def resblock(x, p):
    """[conv3x3 -> PReLU -> conv3x3] + conv1x1 skip; skip+residual fused."""
    C, B, H, W = x.shape
    a1, _, _ = _im2col_T(x, 3, 1, 1)
    y1 = _pallas_convT(p['w1'], p['b1'], a1, p['alpha'], jnp.bfloat16)
    a2, _, _ = _im2col_T(y1.reshape(C, B, H, W), 3, 1, 1)
    xs = x.reshape(C, B * H * W)                     # 1x1 skip operand (no im2col)
    y2 = _pallas_convT(p['w2'], p['b2'], a2, jnp.asarray(1.0, jnp.float32),
                       jnp.bfloat16, skip=(p['ws'], p['bs'], xs))
    return y2.reshape(C, B, H, W)


# -----------------------------------------------------------------------------
# Parameter init (deterministic synthetic; weights pre-packed + pre-cast ONCE)
# -----------------------------------------------------------------------------
def _pack_conv3(w_torch):                            # (OC, IC, 3, 3) -> (OC, 9*IC) bf16
    OC, IC, KH, KW = w_torch.shape
    return jnp.transpose(w_torch, (0, 2, 3, 1)).reshape(OC, KH * KW * IC) \
              .astype(jnp.bfloat16)


def _pack_conv1(w_torch):                            # (OC, IC, 1, 1) -> (OC, IC) bf16
    OC, IC = w_torch.shape[:2]
    return w_torch.reshape(OC, IC).astype(jnp.bfloat16)


def _pack_bias(b):                                   # (OC,) -> (OC, 1) f32
    return b.astype(jnp.float32).reshape(-1, 1)


def init_encoder_params(key, config):
    n_channels = config['n_channels']
    strides = config['strides']
    num_blocks = config['num_blocks']
    inj_amt = config['inj_amt']
    inj_out = config['inj_out_chn']

    keys = iter(jax.random.split(key, 1024))

    def w(shape, scale=0.1):
        return scale * jax.random.normal(next(keys), shape, dtype=jnp.float32)

    def b(n):
        return 0.01 * jax.random.normal(next(keys), (n,), dtype=jnp.float32)

    def prelu():
        return jnp.asarray(0.25, jnp.float32)

    def res_params(c):
        return dict(w1=_pack_conv3(w((c, c, 3, 3))), b1=_pack_bias(b(c)),
                    alpha=prelu(),
                    w2=_pack_conv3(w((c, c, 3, 3))), b2=_pack_bias(b(c)),
                    ws=_pack_conv1(w((c, c, 1, 1))), bs=_pack_bias(b(c)))

    blocks = []
    for i in range(len(strides) - 1):
        ic, oc = n_channels[i], n_channels[i + 1]
        blocks.append(dict(
            inj=dict(w=w((inj_out, inj_amt)), b=b(inj_out), alpha=prelu()),
            conv_w=_pack_conv3(w((oc, ic + inj_out, 3, 3))),
            conv_b=_pack_bias(b(oc)),
            prelu=prelu(),
            res=[res_params(oc) for _ in range(num_blocks)]))
    return dict(blocks=blocks,
                last_w=_pack_conv3(w((n_channels[-1], n_channels[-2], 3, 3))),
                last_b=_pack_bias(b(n_channels[-1])))


# -----------------------------------------------------------------------------
# EncoderD forward (static config closed over; only arrays traced)
# -----------------------------------------------------------------------------
def encoder_forward(params, x_nchw, injection_data, *, config,
                    lateral_connection='None'):
    """Mirrors EncoderD.forward: returns (x, lateral_inputs)."""
    strides = config['strides']
    # NCHW -> CBHW (channels on sublanes, batch*spatial on lanes downstream).
    x = jnp.transpose(x_nchw, (1, 0, 2, 3)).astype(jnp.bfloat16)
    inj = injection_data.astype(jnp.float32)

    lateral_inputs = []
    for i, lp in enumerate(params['blocks']):
        # injectorBlock (inj_operator='concatenate')
        x = injector_concat(x, inj, lp['inj'])
        # IntConv2d -> BN('None') (identity) -> PReLU (fused into the GEMM)
        x = conv2d_T(x, lp['conv_w'], lp['conv_b'], stride=strides[i],
                     alpha=lp['prelu'])
        # nn.Identity(): lateral collection point (interface stays NCHW f32)
        if lateral_connection != 'None':
            lateral_inputs.append(
                jnp.transpose(x, (1, 0, 2, 3)).astype(jnp.float32))
        # ResBlocks(oc, num_blocks, skip_connection='conv2d')
        for rp in lp['res']:
            x = resblock(x, rp)
    # Last layer: IntConv2d only (no injection, no activation), f32 output.
    x = conv2d_T(x, params['last_w'], params['last_b'],
                 stride=strides[-1], alpha=None, out_dtype=jnp.float32)
    return jnp.transpose(x, (1, 0, 2, 3)), lateral_inputs


# -----------------------------------------------------------------------------
if __name__ == "__main__":
    # Config consistent with the module:
    #   n_channels=[3, 8, 16], strides=[2, 2], num_blocks=2, bn='None',
    #   skip_connection='conv2d', lateral_connection='identity',
    #   injections=[1, 1] -> inj_amt=2, inj_out_chn=4, inj_operator='concatenate'.
    config = dict(n_channels=[3, 8, 16], strides=[2, 2], num_blocks=2,
                  inj_amt=2, inj_out_chn=4)

    key = jax.random.PRNGKey(0)
    kp, kx, ki = jax.random.split(key, 3)
    params = init_encoder_params(kp, config)

    B, H, W = 2, 16, 16
    x = jax.random.normal(kx, (B, config['n_channels'][0], H, W), jnp.float32)
    injection_data = jax.random.normal(ki, (B, config['inj_amt']), jnp.float32)

    fwd = jax.jit(functools.partial(encoder_forward, config=config,
                                    lateral_connection='identity'))
    x_out, laterals = fwd(params, x, injection_data)
    x_out = jax.block_until_ready(x_out)

    assert x_out.shape == (B, config['n_channels'][-1], H // 4, W // 4), x_out.shape
    assert len(laterals) == len(config['strides']) - 1, len(laterals)
    assert laterals[0].shape == (B, config['n_channels'][1], H // 2, W // 2), \
        laterals[0].shape
    print("KERNEL_OK")
</pallas_src>

<mosaic_0001>
module attributes {stable_mosaic.version = 11 : i64} {
  func.func @_convT_kernel(%arg0: i32, %arg1: memref<1x1xf32, #tpu.memory_space<vmem>>, %arg2: memref<8x63xbf16, #tpu.memory_space<vmem>>, %arg3: memref<8x1xf32, #tpu.memory_space<vmem>>, %arg4: memref<63x128xbf16, #tpu.memory_space<vmem>>, %arg5: memref<8x128xbf16, #tpu.memory_space<vmem>>) attributes {dimension_semantics = [#tpu.dimension_semantics<parallel>], iteration_bounds = array<i64: 1>, scalar_prefetch = 0 : i64, scratch_operands = 0 : i64, tpu.core_type = #tpu.core_type<tc>, window_params = [{pipeline_mode = #tpu.pipeline_mode<synchronous>, transform_indices = @transform_0, window_bounds = array<i64: 1, 1>}, {pipeline_mode = #tpu.pipeline_mode<synchronous>, transform_indices = @transform_1, window_bounds = array<i64: 8, 63>}, {pipeline_mode = #tpu.pipeline_mode<synchronous>, transform_indices = @transform_2, window_bounds = array<i64: 8, 1>}, {transform_indices = @transform_3, window_bounds = array<i64: 63, 128>}, {transform_indices = @transform_4, window_bounds = array<i64: 8, 128>}]} {
    %c0 = arith.constant 0 : index
    %c0_0 = arith.constant 0 : index
    %0 = vector.load %arg2[%c0, %c0_0] : memref<8x63xbf16, #tpu.memory_space<vmem>>, vector<8x63xbf16>
    %c0_1 = arith.constant 0 : index
    %c0_2 = arith.constant 0 : index
    %1 = vector.load %arg4[%c0_1, %c0_2] : memref<63x128xbf16, #tpu.memory_space<vmem>>, vector<63x128xbf16>
    %cst = arith.constant dense<0.000000e+00> : vector<8x128xf32>
    %2 = tpu.matmul %0, %1, %cst {dimension_numbers = #tpu.dot_dimension_numbers<[1], [0], [0], [1], [0, 0, 1, 1], [], []>} : vector<8x63xbf16>, vector<63x128xbf16>, vector<8x128xf32> -> vector<8x128xf32>
    %c0_3 = arith.constant 0 : index
    %c0_4 = arith.constant 0 : index
    %3 = vector.load %arg3[%c0_3, %c0_4] : memref<8x1xf32, #tpu.memory_space<vmem>>, vector<8x1xf32>
    %4 = vector.broadcast %3 : vector<8x1xf32> to vector<8x128xf32>
    %5 = arith.addf %2, %4 : vector<8x128xf32>
    %cst_5 = arith.constant 0.000000e+00 : f32
    %6 = vector.broadcast %cst_5 : f32 to vector<8x128xf32>
    %7 = arith.cmpf oge, %5, %6 : vector<8x128xf32>
    %c0_6 = arith.constant 0 : index
    %c0_7 = arith.constant 0 : index
    %8 = vector.load %arg1[%c0_6, %c0_7] : memref<1x1xf32, #tpu.memory_space<vmem>>, vector<1x1xf32>
    %9 = vector.broadcast %8 : vector<1x1xf32> to vector<8x128xf32>
    %10 = arith.mulf %9, %5 : vector<8x128xf32>
    %11 = arith.select %7, %5, %10 : vector<8x128xi1>, vector<8x128xf32>
    %12 = arith.truncf %11 : vector<8x128xf32> to vector<8x128xbf16>
    %c0_8 = arith.constant 0 : index
    %c0_9 = arith.constant 0 : index
    %13 = vector.load %arg5[%c0_8, %c0_9] : memref<8x128xbf16, #tpu.memory_space<vmem>>, vector<8x128xbf16>
    tpu.vector_store %arg5[%c0_8, %c0_9], %12 {strides = array<i32>} : memref<8x128xbf16, #tpu.memory_space<vmem>>, vector<8x128xbf16>,
    return
  }
  func.func @transform_0(%arg0: i32) -> (i32, i32) {
    %c0_i32 = arith.constant 0 : i32
    %c0_i32_0 = arith.constant 0 : i32
    %c0_i32_1 = arith.constant 0 : i32
    return %c0_i32, %c0_i32_0 : i32, i32
  }
  func.func @transform_1(%arg0: i32) -> (i32, i32) {
    %c0_i32 = arith.constant 0 : i32
    %c0_i32_0 = arith.constant 0 : i32
    %c0_i32_1 = arith.constant 0 : i32
    return %c0_i32, %c0_i32_0 : i32, i32
  }
  func.func @transform_2(%arg0: i32) -> (i32, i32) {
    %c0_i32 = arith.constant 0 : i32
    %c0_i32_0 = arith.constant 0 : i32
    %c0_i32_1 = arith.constant 0 : i32
    return %c0_i32, %c0_i32_0 : i32, i32
  }
  func.func @transform_3(%arg0: i32) -> (i32, i32) {
    %c0_i32 = arith.constant 0 : i32
    %c0_i32_0 = arith.constant 0 : i32
    return %c0_i32, %arg0 : i32, i32
  }
  func.func @transform_4(%arg0: i32) -> (i32, i32) {
    %c0_i32 = arith.constant 0 : i32
    %c0_i32_0 = arith.constant 0 : i32
    return %c0_i32, %arg0 : i32, i32
  }
}

module attributes {stable_mosaic.version = 11 : i64} {
  func.func @_convT_skip_kernel(%arg0: i32, %arg1: memref<1x1xf32, #tpu.memory_space<vmem>>, %arg2: memref<8x72xbf16, #tpu.memory_space<vmem>>, %arg3: memref<8x1xf32, #tpu.memory_space<vmem>>, %arg4: memref<72x128xbf16, #tpu.memory_space<vmem>>, %arg5: memref<8x8xbf16, #tpu.memory_space<vmem>>, %arg6: memref<8x1xf32, #tpu.memory_space<vmem>>, %arg7: memref<8x128xbf16, #tpu.memory_space<vmem>>, %arg8: memref<8x128xbf16, #tpu.memory_space<vmem>>) attributes {dimension_semantics = [#tpu.dimension_semantics<parallel>], iteration_bounds = array<i64: 1>, scalar_prefetch = 0 : i64, scratch_operands = 0 : i64, tpu.core_type = #tpu.core_type<tc>, window_params = [{pipeline_mode = #tpu.pipeline_mode<synchronous>, transform_indices = @transform_0, window_bounds = array<i64: 1, 1>}, {pipeline_mode = #tpu.pipeline_mode<synchronous>, transform_indices = @transform_1, window_bounds = array<i64: 8, 72>}, {pipeline_mode = #tpu.pipeline_mode<synchronous>, transform_indices = @transform_2, window_bounds = array<i64: 8, 1>}, {transform_indices = @transform_3, window_bounds = array<i64: 72, 128>}, {pipeline_mode = #tpu.pipeline_mode<synchronous>, transform_indices = @transform_4, window_bounds = array<i64: 8, 8>}, {pipeline_mode = #tpu.pipeline_mode<synchronous>, transform_indices = @transform_5, window_bounds = array<i64: 8, 1>}, {transform_indices = @transform_6, window_bounds = array<i64: 8, 128>}, {transform_indices = @transform_7, window_bounds = array<i64: 8, 128>}]} {
    %c0 = arith.constant 0 : index
    %c0_0 = arith.constant 0 : index
    %0 = vector.load %arg2[%c0, %c0_0] : memref<8x72xbf16, #tpu.memory_space<vmem>>, vector<8x72xbf16>
    %c0_1 = arith.constant 0 : index
    %c0_2 = arith.constant 0 : index
    %1 = vector.load %arg4[%c0_1, %c0_2] : memref<72x128xbf16, #tpu.memory_space<vmem>>, vector<72x128xbf16>
    %cst = arith.constant dense<0.000000e+00> : vector<8x128xf32>
    %2 = tpu.matmul %0, %1, %cst {dimension_numbers = #tpu.dot_dimension_numbers<[1], [0], [0], [1], [0, 0, 1, 1], [], []>} : vector<8x72xbf16>, vector<72x128xbf16>, vector<8x128xf32> -> vector<8x128xf32>
    %c0_3 = arith.constant 0 : index
    %c0_4 = arith.constant 0 : index
    %3 = vector.load %arg5[%c0_3, %c0_4] : memref<8x8xbf16, #tpu.memory_space<vmem>>, vector<8x8xbf16>
    %c0_5 = arith.constant 0 : index
    %c0_6 = arith.constant 0 : index
    %4 = vector.load %arg7[%c0_5, %c0_6] : memref<8x128xbf16, #tpu.memory_space<vmem>>, vector<8x128xbf16>
    %cst_7 = arith.constant dense<0.000000e+00> : vector<8x128xf32>
    %5 = tpu.matmul %3, %4, %cst_7 {dimension_numbers = #tpu.dot_dimension_numbers<[1], [0], [0], [1], [0, 0, 1, 1], [], []>} : vector<8x8xbf16>, vector<8x128xbf16>, vector<8x128xf32> -> vector<8x128xf32>
    %c0_8 = arith.constant 0 : index
    %c0_9 = arith.constant 0 : index
    %6 = vector.load %arg3[%c0_8, %c0_9] : memref<8x1xf32, #tpu.memory_space<vmem>>, vector<8x1xf32>
    %7 = vector.broadcast %6 : vector<8x1xf32> to vector<8x128xf32>
    %8 = arith.addf %2, %7 : vector<8x128xf32>
    %9 = arith.addf %8, %5 : vector<8x128xf32>
    %c0_10 = arith.constant 0 : index
    %c0_11 = arith.constant 0 : index
    %10 = vector.load %arg6[%c0_10, %c0_11] : memref<8x1xf32, #tpu.memory_space<vmem>>, vector<8x1xf32>
    %11 = vector.broadcast %10 : vector<8x1xf32> to vector<8x128xf32>
    %12 = arith.addf %9, %11 : vector<8x128xf32>
    %cst_12 = arith.constant 0.000000e+00 : f32
    %13 = vector.broadcast %cst_12 : f32 to vector<8x128xf32>
    %14 = arith.cmpf oge, %12, %13 : vector<8x128xf32>
    %c0_13 = arith.constant 0 : index
    %c0_14 = arith.constant 0 : index
    %15 = vector.load %arg1[%c0_13, %c0_14] : memref<1x1xf32, #tpu.memory_space<vmem>>, vector<1x1xf32>
    %16 = vector.broadcast %15 : vector<1x1xf32> to vector<8x128xf32>
    %17 = arith.mulf %16, %12 : vector<8x128xf32>
    %18 = arith.select %14, %12, %17 : vector<8x128xi1>, vector<8x128xf32>
    %19 = arith.truncf %18 : vector<8x128xf32> to vector<8x128xbf16>
    %c0_15 = arith.constant 0 : index
    %c0_16 = arith.constant 0 : index
    %20 = vector.load %arg8[%c0_15, %c0_16] : memref<8x128xbf16, #tpu.memory_space<vmem>>, vector<8x128xbf16>
    tpu.vector_store %arg8[%c0_15, %c0_16], %19 {strides = array<i32>} : memref<8x128xbf16, #tpu.memory_space<vmem>>, vector<8x128xbf16>,
    return
  }
  func.func @transform_0(%arg0: i32) -> (i32, i32) {
    %c0_i32 = arith.constant 0 : i32
    %c0_i32_0 = arith.constant 0 : i32
    %c0_i32_1 = arith.constant 0 : i32
    return %c0_i32, %c0_i32_0 : i32, i32
  }
  func.func @transform_1(%arg0: i32) -> (i32, i32) {
    %c0_i32 = arith.constant 0 : i32
    %c0_i32_0 = arith.constant 0 : i32
    %c0_i32_1 = arith.constant 0 : i32
    return %c0_i32, %c0_i32_0 : i32, i32
  }
  func.func @transform_2(%arg0: i32) -> (i32, i32) {
    %c0_i32 = arith.constant 0 : i32
    %c0_i32_0 = arith.constant 0 : i32
    %c0_i32_1 = arith.constant 0 : i32
    return %c0_i32, %c0_i32_0 : i32, i32
  }
  func.func @transform_3(%arg0: i32) -> (i32, i32) {
    %c0_i32 = arith.constant 0 : i32
    %c0_i32_0 = arith.constant 0 : i32
    return %c0_i32, %arg0 : i32, i32
  }
  func.func @transform_4(%arg0: i32) -> (i32, i32) {
    %c0_i32 = arith.constant 0 : i32
    %c0_i32_0 = arith.constant 0 : i32
    %c0_i32_1 = arith.constant 0 : i32
    return %c0_i32, %c0_i32_0 : i32, i32
  }
  func.func @transform_5(%arg0: i32) -> (i32, i32) {
    %c0_i32 = arith.constant 0 : i32
    %c0_i32_0 = arith.constant 0 : i32
    %c0_i32_1 = arith.constant 0 : i32
    return %c0_i32, %c0_i32_0 : i32, i32
  }
  func.func @transform_6(%arg0: i32) -> (i32, i32) {
    %c0_i32 = arith.constant 0 : i32
    %c0_i32_0 = arith.constant 0 : i32
    return %c0_i32, %arg0 : i32, i32
  }
  func.func @transform_7(%arg0: i32) -> (i32, i32) {
    %c0_i32 = arith.constant 0 : i32
    %c0_i32_0 = arith.constant 0 : i32
    return %c0_i32, %arg0 : i32, i32
  }
}

module attributes {stable_mosaic.version = 11 : i64} {
  func.func @_convT_kernel(%arg0: i32, %arg1: memref<1x1xf32, #tpu.memory_space<vmem>>, %arg2: memref<8x72xbf16, #tpu.memory_space<vmem>>, %arg3: memref<8x1xf32, #tpu.memory_space<vmem>>, %arg4: memref<72x128xbf16, #tpu.memory_space<vmem>>, %arg5: memref<8x128xbf16, #tpu.memory_space<vmem>>) attributes {dimension_semantics = [#tpu.dimension_semantics<parallel>], iteration_bounds = array<i64: 1>, scalar_prefetch = 0 : i64, scratch_operands = 0 : i64, tpu.core_type = #tpu.core_type<tc>, window_params = [{pipeline_mode = #tpu.pipeline_mode<synchronous>, transform_indices = @transform_0, window_bounds = array<i64: 1, 1>}, {pipeline_mode = #tpu.pipeline_mode<synchronous>, transform_indices = @transform_1, window_bounds = array<i64: 8, 72>}, {pipeline_mode = #tpu.pipeline_mode<synchronous>, transform_indices = @transform_2, window_bounds = array<i64: 8, 1>}, {transform_indices = @transform_3, window_bounds = array<i64: 72, 128>}, {transform_indices = @transform_4, window_bounds = array<i64: 8, 128>}]} {
    %c0 = arith.constant 0 : index
    %c0_0 = arith.constant 0 : index
    %0 = vector.load %arg2[%c0, %c0_0] : memref<8x72xbf16, #tpu.memory_space<vmem>>, vector<8x72xbf16>
    %c0_1 = arith.constant 0 : index
    %c0_2 = arith.constant 0 : index
    %1 = vector.load %arg4[%c0_1, %c0_2] : memref<72x128xbf16, #tpu.memory_space<vmem>>, vector<72x128xbf16>
    %cst = arith.constant dense<0.000000e+00> : vector<8x128xf32>
    %2 = tpu.matmul %0, %1, %cst {dimension_numbers = #tpu.dot_dimension_numbers<[1], [0], [0], [1], [0, 0, 1, 1], [], []>} : vector<8x72xbf16>, vector<72x128xbf16>, vector<8x128xf32> -> vector<8x128xf32>
    %c0_3 = arith.constant 0 : index
    %c0_4 = arith.constant 0 : index
    %3 = vector.load %arg3[%c0_3, %c0_4] : memref<8x1xf32, #tpu.memory_space<vmem>>, vector<8x1xf32>
    %4 = vector.broadcast %3 : vector<8x1xf32> to vector<8x128xf32>
    %5 = arith.addf %2, %4 : vector<8x128xf32>
    %cst_5 = arith.constant 0.000000e+00 : f32
    %6 = vector.broadcast %cst_5 : f32 to vector<8x128xf32>
    %7 = arith.cmpf oge, %5, %6 : vector<8x128xf32>
    %c0_6 = arith.constant 0 : index
    %c0_7 = arith.constant 0 : index
    %8 = vector.load %arg1[%c0_6, %c0_7] : memref<1x1xf32, #tpu.memory_space<vmem>>, vector<1x1xf32>
    %9 = vector.broadcast %8 : vector<1x1xf32> to vector<8x128xf32>
    %10 = arith.mulf %9, %5 : vector<8x128xf32>
    %11 = arith.select %7, %5, %10 : vector<8x128xi1>, vector<8x128xf32>
    %12 = arith.truncf %11 : vector<8x128xf32> to vector<8x128xbf16>
    %c0_8 = arith.constant 0 : index
    %c0_9 = arith.constant 0 : index
    %13 = vector.load %arg5[%c0_8, %c0_9] : memref<8x128xbf16, #tpu.memory_space<vmem>>, vector<8x128xbf16>
    tpu.vector_store %arg5[%c0_8, %c0_9], %12 {strides = array<i32>} : memref<8x128xbf16, #tpu.memory_space<vmem>>, vector<8x128xbf16>,
    return
  }
  func.func @transform_0(%arg0: i32) -> (i32, i32) {
    %c0_i32 = arith.constant 0 : i32
    %c0_i32_0 = arith.constant 0 : i32
    %c0_i32_1 = arith.constant 0 : i32
    return %c0_i32, %c0_i32_0 : i32, i32
  }
  func.func @transform_1(%arg0: i32) -> (i32, i32) {
    %c0_i32 = arith.constant 0 : i32
    %c0_i32_0 = arith.constant 0 : i32
    %c0_i32_1 = arith.constant 0 : i32
    return %c0_i32, %c0_i32_0 : i32, i32
  }
  func.func @transform_2(%arg0: i32) -> (i32, i32) {
    %c0_i32 = arith.constant 0 : i32
    %c0_i32_0 = arith.constant 0 : i32
    %c0_i32_1 = arith.constant 0 : i32
    return %c0_i32, %c0_i32_0 : i32, i32
  }
  func.func @transform_3(%arg0: i32) -> (i32, i32) {
    %c0_i32 = arith.constant 0 : i32
    %c0_i32_0 = arith.constant 0 : i32
    return %c0_i32, %arg0 : i32, i32
  }
  func.func @transform_4(%arg0: i32) -> (i32, i32) {
    %c0_i32 = arith.constant 0 : i32
    %c0_i32_0 = arith.constant 0 : i32
    return %c0_i32, %arg0 : i32, i32
  }
}

module attributes {stable_mosaic.version = 11 : i64} {
  func.func @_convT_kernel(%arg0: i32, %arg1: memref<1x1xf32, #tpu.memory_space<vmem>>, %arg2: memref<16x72xbf16, #tpu.memory_space<vmem>>, %arg3: memref<16x1xf32, #tpu.memory_space<vmem>>, %arg4: memref<72x32xbf16, #tpu.memory_space<vmem>>, %arg5: memref<16x32xf32, #tpu.memory_space<vmem>>) attributes {dimension_semantics = [#tpu.dimension_semantics<parallel>], iteration_bounds = array<i64: 1>, scalar_prefetch = 0 : i64, scratch_operands = 0 : i64, tpu.core_type = #tpu.core_type<tc>, window_params = [{pipeline_mode = #tpu.pipeline_mode<synchronous>, transform_indices = @transform_0, window_bounds = array<i64: 1, 1>}, {pipeline_mode = #tpu.pipeline_mode<synchronous>, transform_indices = @transform_1, window_bounds = array<i64: 16, 72>}, {pipeline_mode = #tpu.pipeline_mode<synchronous>, transform_indices = @transform_2, window_bounds = array<i64: 16, 1>}, {transform_indices = @transform_3, window_bounds = array<i64: 72, 32>}, {transform_indices = @transform_4, window_bounds = array<i64: 16, 32>}]} {
    %c0 = arith.constant 0 : index
    %c0_0 = arith.constant 0 : index
    %0 = vector.load %arg2[%c0, %c0_0] : memref<16x72xbf16, #tpu.memory_space<vmem>>, vector<16x72xbf16>
    %c0_1 = arith.constant 0 : index
    %c0_2 = arith.constant 0 : index
    %1 = vector.load %arg4[%c0_1, %c0_2] : memref<72x32xbf16, #tpu.memory_space<vmem>>, vector<72x32xbf16>
    %cst = arith.constant dense<0.000000e+00> : vector<16x32xf32>
    %2 = tpu.matmul %0, %1, %cst {dimension_numbers = #tpu.dot_dimension_numbers<[1], [0], [0], [1], [0, 0, 1, 1], [], []>} : vector<16x72xbf16>, vector<72x32xbf16>, vector<16x32xf32> -> vector<16x32xf32>
    %c0_3 = arith.constant 0 : index
    %c0_4 = arith.constant 0 : index
    %3 = vector.load %arg3[%c0_3, %c0_4] : memref<16x1xf32, #tpu.memory_space<vmem>>, vector<16x1xf32>
    %4 = vector.broadcast %3 : vector<16x1xf32> to vector<16x32xf32>
    %5 = arith.addf %2, %4 : vector<16x32xf32>
    %cst_5 = arith.constant 0.000000e+00 : f32
    %6 = vector.broadcast %cst_5 : f32 to vector<16x32xf32>
    %7 = arith.cmpf oge, %5, %6 : vector<16x32xf32>
    %c0_6 = arith.constant 0 : index
    %c0_7 = arith.constant 0 : index
    %8 = vector.load %arg1[%c0_6, %c0_7] : memref<1x1xf32, #tpu.memory_space<vmem>>, vector<1x1xf32>
    %9 = vector.broadcast %8 : vector<1x1xf32> to vector<16x32xf32>
    %10 = arith.mulf %9, %5 : vector<16x32xf32>
    %11 = arith.select %7, %5, %10 : vector<16x32xi1>, vector<16x32xf32>
    %c0_8 = arith.constant 0 : index
    %c0_9 = arith.constant 0 : index
    %12 = vector.load %arg5[%c0_8, %c0_9] : memref<16x32xf32, #tpu.memory_space<vmem>>, vector<16x32xf32>
    tpu.vector_store %arg5[%c0_8, %c0_9], %11 {strides = array<i32>} : memref<16x32xf32, #tpu.memory_space<vmem>>, vector<16x32xf32>,
    return
  }
  func.func @transform_0(%arg0: i32) -> (i32, i32) {
    %c0_i32 = arith.constant 0 : i32
    %c0_i32_0 = arith.constant 0 : i32
    %c0_i32_1 = arith.constant 0 : i32
    return %c0_i32, %c0_i32_0 : i32, i32
  }
  func.func @transform_1(%arg0: i32) -> (i32, i32) {
    %c0_i32 = arith.constant 0 : i32
    %c0_i32_0 = arith.constant 0 : i32
    %c0_i32_1 = arith.constant 0 : i32
    return %c0_i32, %c0_i32_0 : i32, i32
  }
  func.func @transform_2(%arg0: i32) -> (i32, i32) {
    %c0_i32 = arith.constant 0 : i32
    %c0_i32_0 = arith.constant 0 : i32
    %c0_i32_1 = arith.constant 0 : i32
    return %c0_i32, %c0_i32_0 : i32, i32
  }
  func.func @transform_3(%arg0: i32) -> (i32, i32) {
    %c0_i32 = arith.constant 0 : i32
    %c0_i32_0 = arith.constant 0 : i32
    return %c0_i32, %arg0 : i32, i32
  }
  func.func @transform_4(%arg0: i32) -> (i32, i32) {
    %c0_i32 = arith.constant 0 : i32
    %c0_i32_0 = arith.constant 0 : i32
    return %c0_i32, %arg0 : i32, i32
  }
}

</mosaic_0001>

<bundles_post_ra>
// kernel: encoder_forward.6
= control target key start
LH: loop header
LB: loop body
LE: loop exit
PB: predicated region body
PF: predicated region fallthrough
CT: control target
= control target key end

     0   :  { %vm62_vm0 = vcmask 1046528   ;;  %vm63_vm1 = vcmask 1047552   ;;  %v160_v0 = vmov 0.0   ;;  %v161_v2 = vmov 65535   ;;  %s213_s3 = inlined_call_operand.vmem [shape: bf16[63,128], index: 3, kind: input, shape index: {}]   ;;  %s214_s0 = inlined_call_operand.<no memory space> [shape: f32[1,1], index: 0, kind: input, shape index: {}]   ;;  %s215_s2 = inlined_call_operand.vmem [shape: f32[8,1], index: 2, kind: input, shape index: {}]   ;;  %s216_s1 = inlined_call_operand.vmem [shape: bf16[8,63], index: 1, kind: input, shape index: {}]   ;;  %s217_s4 = inlined_call_operand.vmem [shape: bf16[8,128], index: 4, kind: output, shape index: {}]  }
   0x1   :  { %139 = vmatprep.subr.bf16.mxu0 %v160_v0  ;;  %v156_v1 = vld [vmem:[%s213_s3 + $0x18] sm:$0xff]   ;;  %v64_v3 = vsel %vm62_vm0, 4294967295, %v161_v2  ;;  %v9_v4 = vstv %s214_s0  ;;  %vm162_vm2 = vmmov 0   ;;  %v157_v7 = vld [vmem:[%s213_s3 + $0x10] sm:$0xff]   ;;  %v29_v8 = vld [vmem:[%s215_s2] sm:$0xff]  ;;  %v163_v9 = vmov 0  }
   0x2   :  { %v65_v5 = vsel %vm63_vm1, %v64_v3, 0  ;;  %10 = vst [vmem:[#allocation2] sm:$0x1] %v9_v4  ;;  %147 = vmatprep.mubr.msk.bf16.mxu0 %vm162_vm2, %v160_v0  ;;  %155 = vset.pattern.permute.xlu0 %v163_v9  ;;  %v158_v10 = vld [vmem:[%s213_s3 + $0x8] sm:$0xff]   ;;  %v159_v12 = vld [vmem:[%s213_s3] sm:$0xff]   ;;  %vm58_vm3 = vcmask 515072  }
   0x3   :  { %v67_v6 = vand.u32 %v156_v1, %v65_v5  ;;  %32 = vperm.xlu0 %155, %v29_v8   ;;  %v20_v13 = vld [vmem:[%s216_s1] sm:$0xf] }
   0x5   :  { %140 = vmatpush3.bf16.msra.mxu0 %v67_v6 }
   0x6   :  { %141 = vmatprep.subr.bf16.mxu0 %v160_v0 }
   0x9   :  { %142 = vmatpush3.bf16.msra.mxu0 %v157_v7  ;;  %v133_v11 = vld [vmem:[#allocation2] ss:$0 sm:$0xff] }
   0xa   :  { %143 = vmatprep.subr.bf16.mxu0 %v160_v0  ;;  %117 = vperm.xlu0 %155, %v133_v11  }
   0xd   :  { %144 = vmatpush3.bf16.msra.mxu0 %v158_v10 }
   0xe   :  { %145 = vmatprep.subr.bf16.mxu0 %v160_v0 }
  0x11   :  { %146 = vmatpush3.bf16.msra.mxu0 %v159_v12 }
  0x14   :  { %148 = vmatmul.mubr.msk.bf16.vlgmr.msra.gmra.mxu0 %vm58_vm3, %v20_v13 }
  0x7e   :  { %v33_v14 = vpop.permute.xlu0 %32 }
  0x85   :  { %v118_v17 = vpop.permute.xlu0 %117 }
  0xd4   :  { %v103_v15 = vpop.f32.mrf.mxu0 }
  0xd5   :  { %v104_v16 = vadd.f32 %v103_v15, %v33_v14 }
  0xd6   :  { %v149_v18 = vpop.f32.mrf.mxu0 }
  0xd7   :  { %vm109_vm4 = vcmp.ge.f32.partialorder %v104_v16, 0.0  ;;  %v120_v19 = vmul.f32 %v118_v17, %v104_v16 }
  0xd8   :  { %v106_v20 = vpop.f32.mrf.mxu0 }
  0xd9   :  { %v121_v21 = vsel %vm109_vm4, %v104_v16, %v120_v19 }
  0xda   :  { %v122_v22 = vpack.c.bf16 %v121_v21, %v121_v21  ;;  %v150_v23 = vpop.f32.mrf.mxu0 }
  0xdc   :  { %123 = vst [vmem:[%s217_s4] sm:$0xf] %v122_v22 }

// kernel: encoder_forward.7
= control target key start
LH: loop header
LB: loop body
LE: loop exit
PB: predicated region body
PF: predicated region fallthrough
CT: control target
= control target key end

     0   :  { %vm67_vm0 = vcmask 1043456   ;;  %v166_v0 = vmov 0.0   ;;  %vm167_vm1 = vmmov 0   ;;  %v168_v4 = vmov 0   ;;  %s221_s3 = inlined_call_operand.vmem [shape: bf16[72,128], index: 3, kind: input, shape index: {}]   ;;  %s222_s0 = inlined_call_operand.<no memory space> [shape: f32[1,1], index: 0, kind: input, shape index: {}]   ;;  %s223_s2 = inlined_call_operand.vmem [shape: f32[8,1], index: 2, kind: input, shape index: {}]   ;;  %s224_s1 = inlined_call_operand.vmem [shape: bf16[8,72], index: 1, kind: input, shape index: {}]   ;;  %s225_s4 = inlined_call_operand.vmem [shape: bf16[8,128], index: 4, kind: output, shape index: {}]  }
   0x1   :  { %143 = vmatprep.subr.bf16.mxu0 %v166_v0  ;;  %v161_v1 = vld [vmem:[%s221_s3 + $0x20] ss:$0 sps:$4 sm:$0xff]   ;;  %153 = vmatprep.mubr.msk.bf16.mxu0 %vm167_vm1, %v166_v0  ;;  %v9_v2 = vstv %s222_s0  ;;  %v162_v5 = vld [vmem:[%s221_s3 + $0x18] sm:$0xff]   ;;  %v163_v7 = vld [vmem:[%s221_s3 + $0x10] sm:$0xff]   ;;  %vm63_vm2 = vcmask 588800  }
   0x2   :  { %10 = vst [vmem:[#allocation2] sm:$0x1] %v9_v2  ;;  %v69_v3 = vsel %vm67_vm0, %v161_v1, 0  ;;  %160 = vset.pattern.permute.xlu0 %v168_v4  ;;  %v30_v6 = vld [vmem:[%s223_s2] sm:$0xff]  ;;  %v164_v9 = vld [vmem:[%s221_s3 + $0x8] sm:$0xff]  }
   0x3   :  { %144 = vmatpush3.bf16.msra.mxu0 %v69_v3  ;;  %33 = vperm.xlu0 %160, %v30_v6   ;;  %v165_v10 = vld [vmem:[%s221_s3] sm:$0xff]  }
   0x4   :  { %145 = vmatprep.subr.bf16.mxu0 %v166_v0  ;;  %v20_v11 = vld [vmem:[%s224_s1] sm:$0xf] }
   0x7   :  { %146 = vmatpush3.bf16.msra.mxu0 %v162_v5 }
   0x8   :  { %147 = vmatprep.subr.bf16.mxu0 %v166_v0 }
   0x9   :  { %v136_v8 = vld [vmem:[#allocation2] ss:$0 sm:$0xff] }
   0xa   :  { %119 = vperm.xlu0 %160, %v136_v8  }
   0xb   :  { %148 = vmatpush3.bf16.msra.mxu0 %v163_v7 }
   0xc   :  { %149 = vmatprep.subr.bf16.mxu0 %v166_v0 }
   0xf   :  { %150 = vmatpush3.bf16.msra.mxu0 %v164_v9 }
  0x10   :  { %151 = vmatprep.subr.bf16.mxu0 %v166_v0 }
  0x13   :  { %152 = vmatpush3.bf16.msra.mxu0 %v165_v10 }
  0x16   :  { %154 = vmatmul.mubr.msk.bf16.vlgmr.msra.gmra.mxu0 %vm63_vm2, %v20_v11 }
  0x7e   :  { %v34_v12 = vpop.permute.xlu0 %33 }
  0x85   :  { %v120_v15 = vpop.permute.xlu0 %119 }
  0xd6   :  { %v105_v13 = vpop.f32.mrf.mxu0 }
  0xd7   :  { %v106_v14 = vadd.f32 %v105_v13, %v34_v12 }
  0xd8   :  { %v155_v16 = vpop.f32.mrf.mxu0 }
  0xd9   :  { %vm111_vm3 = vcmp.ge.f32.partialorder %v106_v14, 0.0  ;;  %v122_v17 = vmul.f32 %v120_v15, %v106_v14 }
  0xda   :  { %v108_v18 = vpop.f32.mrf.mxu0 }
  0xdb   :  { %v123_v19 = vsel %vm111_vm3, %v106_v14, %v122_v17 }
  0xdc   :  { %v124_v20 = vpack.c.bf16 %v123_v19, %v123_v19  ;;  %v156_v21 = vpop.f32.mrf.mxu0 }
  0xde   :  { %125 = vst [vmem:[%s225_s4] sm:$0xf] %v124_v20 }

// kernel: encoder_forward.8
= control target key start
LH: loop header
LB: loop body
LE: loop exit
PB: predicated region body
PF: predicated region fallthrough
CT: control target
= control target key end

     0   :  { %vm45_vm0 = vcmask 1043456   ;;  %v242_v0 = vmov 0.0   ;;  %vm243_vm1 = vmmov 0   ;;  %vm41_vm2 = vcmask 64512   ;;  %s323_s3 = inlined_call_operand.vmem [shape: bf16[72,128], index: 3, kind: input, shape index: {}]   ;;  %s324_s6 = inlined_call_operand.vmem [shape: bf16[8,128], index: 6, kind: input, shape index: {}]   ;;  %s325_s0 = inlined_call_operand.<no memory space> [shape: f32[1,1], index: 0, kind: input, shape index: {}]   ;;  %s326_s4 = inlined_call_operand.vmem [shape: bf16[8,8], index: 4, kind: input, shape index: {}]   ;;  %s327_s2 = inlined_call_operand.vmem [shape: f32[8,1], index: 2, kind: input, shape index: {}]   ;;  %s328_s5 = inlined_call_operand.vmem [shape: f32[8,1], index: 5, kind: input, shape index: {}]   ;;  %s329_s1 = inlined_call_operand.vmem [shape: bf16[8,72], index: 1, kind: input, shape index: {}]   ;;  %s330_s7 = inlined_call_operand.vmem [shape: bf16[8,128], index: 7, kind: output, shape index: {}]  }
   0x1   :  { %218 = vmatprep.subr.bf16.mxu1 %v242_v0  ;;  %v237_v1 = vld [vmem:[%s323_s3 + $0x20] ss:$0 sps:$4 sm:$0xff]   ;;  %212 = vmatprep.subr.bf16.mxu0 %v242_v0  ;;  %v12_v2 = vstv %s325_s0  ;;  %v238_v5 = vld [vmem:[%s323_s3 + $0x18] sm:$0xff]   ;;  %v244_v9 = vmov 0   ;;  %v239_v10 = vld [vmem:[%s323_s3 + $0x10] sm:$0xff]   ;;  %vm122_vm3 = vcmask 588800  }
   0x2   :  { %214 = vmatprep.mubr.msk.bf16.mxu0 %vm243_vm1, %v242_v0  ;;  %228 = vmatprep.mubr.msk.bf16.mxu1 %vm243_vm1, %v242_v0  ;;  %13 = vst [vmem:[#allocation2] sm:$0x1] %v12_v2  ;;  %v127_v3 = vsel %vm45_vm0, %v237_v1, 0  ;;  %v40_v4 = vld [vmem:[%s324_s6] sm:$0xf]  ;;  %v240_v13 = vld [vmem:[%s323_s3 + $0x8] sm:$0xff]  }
   0x3   :  { %219 = vmatpush3.bf16.msra.mxu1 %v127_v3  ;;  %v47_v6 = vsel %vm45_vm0, %v40_v4, 0  ;;  %v39_v7 = vld [vmem:[%s326_s4] sm:$0xf]  ;;  %235 = vset.pattern.permute.xlu0 %v244_v9 }
   0x4   :  { %220 = vmatprep.subr.bf16.mxu1 %v242_v0  ;;  %213 = vmatpush3.bf16.msra.mxu0 %v47_v6  ;;  %v89_v8 = vld [vmem:[%s327_s2] sm:$0xff] }
   0x5   :  { %236 = vset.pattern.permute.xlu1 %v244_v9  ;;  %92 = vperm.xlu0 %235, %v89_v8   ;;  %v170_v12 = vld [vmem:[%s328_s5] sm:$0xff] }
   0x6   :  { %v241_v14 = vld [vmem:[%s323_s3] sm:$0xff]  }
   0x7   :  { %221 = vmatpush3.bf16.msra.mxu1 %v238_v5  ;;  %215 = vmatmul.mubr.msk.bf16.vlgmr.msra.gmra.mxu0 %vm41_vm2, %v39_v7  ;;  %v29_v15 = vld [vmem:[%s329_s1] sm:$0xf] }
   0x8   :  { %222 = vmatprep.subr.bf16.mxu1 %v242_v0 }
   0x9   :  { %v203_v11 = vld [vmem:[#allocation2] ss:$0 sm:$0xff]  ;;  %173 = vperm.xlu0 %235, %v170_v12  }
   0xa   :  { %185 = vperm.xlu1 %236, %v203_v11  }
   0xb   :  { %223 = vmatpush3.bf16.msra.mxu1 %v239_v10 }
   0xc   :  { %224 = vmatprep.subr.bf16.mxu1 %v242_v0 }
   0xf   :  { %225 = vmatpush3.bf16.msra.mxu1 %v240_v13 }
  0x10   :  { %226 = vmatprep.subr.bf16.mxu1 %v242_v0 }
  0x13   :  { %227 = vmatpush3.bf16.msra.mxu1 %v241_v14 }
  0x16   :  { %229 = vmatmul.mubr.msk.bf16.vlgmr.msra.gmra.mxu1 %vm122_vm3, %v29_v15 }
  0x80   :  { %v93_v20 = vpop.permute.xlu0 %92 }
  0x84   :  { %v174_v26 = vpop.permute.xlu0 %173 }
  0x85   :  { %v186_v25 = vpop.permute.xlu1 %185 }
  0xc7   :  { %v83_v16 = vpop.f32.mrf.mxu0 }
  0xc9   :  { %v216_v17 = vpop.f32.mrf.mxu0 }
  0xcb   :  { %v86_v18 = vpop.f32.mrf.mxu0 }
  0xcd   :  { %v217_v19 = vpop.f32.mrf.mxu0 }
  0xd6   :  { %v163_v21 = vpop.f32.mrf.mxu1 }
  0xd7   :  { %v164_v22 = vadd.f32 %v163_v21, %v93_v20 }
  0xd8   :  { %v230_v23 = vpop.f32.mrf.mxu1 }
  0xd9   :  { %v169_v24 = vadd.f32 %v164_v22, %v83_v16 }
  0xda   :  { %v166_v27 = vpop.f32.mrf.mxu1 }
  0xdb   :  { %v176_v28 = vadd.f32 %v174_v26, %v169_v24 }
  0xdc   :  { %v231_v29 = vpop.f32.mrf.mxu1 }
  0xdd   :  { %vm177_vm4 = vcmp.ge.f32.partialorder %v176_v28, 0.0  ;;  %v188_v30 = vmul.f32 %v186_v25, %v176_v28 }
  0xdf   :  { %v189_v31 = vsel %vm177_vm4, %v176_v28, %v188_v30 }
  0xe0   :  { %v190_v32 = vpack.c.bf16 %v189_v31, %v189_v31 }
  0xe2   :  { %191 = vst [vmem:[%s330_s7] sm:$0xf] %v190_v32 }

// kernel: encoder_forward.11
= control target key start
LH: loop header
LB: loop body
LE: loop exit
PB: predicated region body
PF: predicated region fallthrough
CT: control target
= control target key end

     0   :  { %vm79_vm0 = vcmask 1043456   ;;  %v186_v0 = vmov 0.0   ;;  %vm187_vm1 = vmmov 0   ;;  %v188_v4 = vmov 0   ;;  %s247_s3 = inlined_call_operand.vmem [shape: bf16[72,32], index: 3, kind: input, shape index: {}]   ;;  %s248_s0 = inlined_call_operand.<no memory space> [shape: f32[1,1], index: 0, kind: input, shape index: {}]   ;;  %s249_s2 = inlined_call_operand.vmem [shape: f32[16,1], index: 2, kind: input, shape index: {}]   ;;  %s250_s1 = inlined_call_operand.vmem [shape: bf16[16,72], index: 1, kind: input, shape index: {}]   ;;  %s251_s4 = inlined_call_operand.vmem [shape: f32[16,32], index: 4, kind: output, shape index: {}]  }
   0x1   :  { %161 = vmatprep.subr.bf16.mxu0 %v186_v0  ;;  %v180_v1 = vld [vmem:[%s247_s3 + $0x20] ss:$0 sps:$4 sm:$0xff]   ;;  %171 = vmatprep.mubr.msk.bf16.mxu0 %vm187_vm1, %v186_v0  ;;  %v9_v2 = vstv %s248_s0  ;;  %v181_v5 = vld [vmem:[%s247_s3 + $0x18] sm:$0xff]   ;;  %v182_v7 = vld [vmem:[%s247_s3 + $0x10] sm:$0xff]   ;;  %vm75_vm2 = vcmask 588800   ;;  %vm140_vm4 = vcmask 261120  }
   0x2   :  { %10 = vst [vmem:[#allocation2] sm:$0x1] %v9_v2  ;;  %v81_v3 = vsel %vm79_vm0, %v180_v1, 0  ;;  %178 = vset.pattern.permute.xlu0 %v188_v4  ;;  %179 = vset.pattern.permute.xlu1 %v188_v4  ;;  %v31_v6 = vld [vmem:[%s249_s2] sm:$0xff]  ;;  %v32_v8 = vld [vmem:[%s249_s2 + $0x8] sm:$0xff] }
   0x3   :  { %162 = vmatpush3.bf16.msra.mxu0 %v81_v3  ;;  %35 = vperm.xlu0 %178, %v31_v6   ;;  %v183_v10 = vld [vmem:[%s247_s3 + $0x8] sm:$0xff]   ;;  %v184_v11 = vld [vmem:[%s247_s3] sm:$0xff]  }
   0x4   :  { %163 = vmatprep.subr.bf16.mxu0 %v186_v0  ;;  %v185_v12 = vld [vmem:[%s250_s1] sm:$0xff]  }
   0x7   :  { %164 = vmatpush3.bf16.msra.mxu0 %v181_v5  ;;  %40 = vperm.xlu0 %178, %v32_v8  }
   0x8   :  { %165 = vmatprep.subr.bf16.mxu0 %v186_v0 }
   0x9   :  { %v154_v9 = vld [vmem:[#allocation2] ss:$0 sm:$0xff] }
   0xa   :  { %133 = vperm.xlu1 %179, %v154_v9  }
   0xb   :  { %166 = vmatpush3.bf16.msra.mxu0 %v182_v7 }
   0xc   :  { %167 = vmatprep.subr.bf16.mxu0 %v186_v0 }
   0xf   :  { %168 = vmatpush3.bf16.msra.mxu0 %v183_v10 }
  0x10   :  { %169 = vmatprep.subr.bf16.mxu0 %v186_v0 }
  0x13   :  { %170 = vmatpush3.bf16.msra.mxu0 %v184_v11 }
  0x16   :  { %172 = vmatmul.mubr.msk.bf16.vlgmr.msra.gmra.mxu0 %vm75_vm2, %v185_v12 }
  0x7e   :  { %v36_v13 = vpop.permute.xlu0 %35 }
  0x82   :  { %v41_v19 = vpop.permute.xlu0 %40 }
  0x85   :  { %v134_v15 = vpop.permute.xlu1 %133 }
  0xd6   :  { %v117_v14 = vpop.f32.mrf.mxu0 }
  0xd7   :  { %v118_v16 = vadd.f32 %v117_v14, %v36_v13 }
  0xd8   :  { %v173_v17 = vpop.f32.mrf.mxu0 }
  0xd9   :  { %vm124_vm3 = vcmp.ge.f32.partialorder %v118_v16, 0.0  ;;  %v136_v18 = vmul.f32 %v134_v15, %v118_v16 }
  0xda   :  { %v120_v20 = vpop.f32.mrf.mxu0 }
  0xdb   :  { %v138_v21 = vsel %vm124_vm3, %v118_v16, %v136_v18  ;;  %v121_v22 = vadd.f32 %v120_v20, %v41_v19 }
  0xdc   :  { %141 = vst.msk [vmem:[%s251_s4] sm:$0xff] %vm140_vm4, %v138_v21  ;;  %v174_v23 = vpop.f32.mrf.mxu0 }
  0xdd   :  { %vm125_vm5 = vcmp.ge.f32.partialorder %v121_v22, 0.0  ;;  %v137_v24 = vmul.f32 %v134_v15, %v121_v22 }
  0xdf   :  { %v139_v25 = vsel %vm125_vm5, %v121_v22, %v137_v24 }
  0xe0   :  { %142 = vst.msk [vmem:[%s251_s4 + $0x8] sm:$0xff] %vm140_vm4, %v139_v25 }

</bundles_post_ra>
